<compile_context>
chip_gen: v5e
topology: v5e:2x2
jax: 0.10.0
libtpu: 0.0.40
codegen_flags: <defaults>
</compile_context>

<pallas_src>
import jax
import jax.numpy as jnp
from jax import lax
from jax.experimental import pallas as pl
from jax.experimental.pallas import tpu as pltpu


def _round_up(v, m):
    return (v + m - 1) // m * m


def _largest_divisor_leq(n, cap):
    best = 1
    for d in range(1, n + 1):
        if n % d == 0 and d <= cap:
            best = d
    return best


def _gram_sym_kernel(bi_ref, bj_ref, xi_ref, xj_ref, o_ref, acc_ref):
    # grid = (pair, k); k (contraction) is last and "arbitrary".
    @pl.when(pl.program_id(1) == 0)
    def _():
        acc_ref[...] = jnp.zeros_like(acc_ref)

    # Transpose-free contraction on dim 1 of both operands (xi @ xj.T); the MXU
    # consumes the RHS in stationary-weight form, accumulation is f32.
    acc_ref[...] += lax.dot_general(
        xi_ref[...],
        xj_ref[...],
        dimension_numbers=(((1,), (1,)), ((), ())),
        preferred_element_type=jnp.float32,
    )

    @pl.when(pl.program_id(1) == pl.num_programs(1) - 1)
    def _():
        o_ref[...] = acc_ref[...].astype(o_ref.dtype)


def linear_kernel(x):
    """Pallas equivalent of LinearKernel.forward: torch.matmul(x, x.t())."""
    assert x.ndim == 2, "LinearKernel.forward expects a 2-D matrix"
    m, k = x.shape

    # ---- M padding / row-tile choice (256-aligned tiles fill the v6e/v7x MXU) ----
    m128 = _round_up(m, 128)
    if m128 <= 128 or m128 % 256 == 0:
        m_pad = m128
    else:
        m_pad = _round_up(m, 256)  # small pad cost buys full-width MXU tiles
    if m_pad % 256 == 0:
        tm = 256 * _largest_divisor_leq(m_pad // 256, 2)  # target tm = tn = 512
    else:
        tm = 128 * _largest_divisor_leq(m_pad // 128, 4)

    # ---- K tile choice: divisor-aware, avoid padding K whenever possible ----
    if k % 128 == 0:
        k_pad = k
        tk = 128 * _largest_divisor_leq(k // 128, 8)      # target tk = 1024, tk | K
    elif k <= 2048:
        k_pad = k
        tk = k   # full-K block (legal: equals full array dim) -> no HBM pad copy
    else:
        k_pad = _round_up(k, 128)                         # zero cols add nothing
        tk = 128 * _largest_divisor_leq(k_pad // 128, 8)

    x_p = x
    if (m_pad, k_pad) != (m, k):
        x_p = jnp.pad(x, ((0, m_pad - m), (0, k_pad - k)))

    grid_m = m_pad // tm
    k_steps = k_pad // tk

    # Upper-triangular (i, j) block pairs: Gram symmetry halves MXU FLOPs.
    pairs = [(i, j) for i in range(grid_m) for j in range(i, grid_m)]
    n_pairs = len(pairs)
    bi = jnp.asarray([p[0] for p in pairs], dtype=jnp.int32)
    bj = jnp.asarray([p[1] for p in pairs], dtype=jnp.int32)

    itemsize = jnp.dtype(x.dtype).itemsize
    cost = pl.CostEstimate(
        flops=2 * n_pairs * tm * tm * k_pad,
        transcendentals=0,
        bytes_accessed=(2 * n_pairs * tm * k_pad + n_pairs * tm * tm) * itemsize,
    )

    out_p = pl.pallas_call(
        _gram_sym_kernel,
        out_shape=jax.ShapeDtypeStruct((m_pad, m_pad), x.dtype),
        grid_spec=pltpu.PrefetchScalarGridSpec(
            num_scalar_prefetch=2,
            grid=(n_pairs, k_steps),
            in_specs=[
                pl.BlockSpec((tm, tk), lambda p, kk, bi_m, bj_m: (bi_m[p], kk)),  # row-block i
                pl.BlockSpec((tm, tk), lambda p, kk, bi_m, bj_m: (bj_m[p], kk)),  # row-block j
            ],
            out_specs=pl.BlockSpec((tm, tm), lambda p, kk, bi_m, bj_m: (bi_m[p], bj_m[p])),
            scratch_shapes=[pltpu.VMEM((tm, tm), jnp.float32)],
        ),
        compiler_params=pltpu.CompilerParams(
            dimension_semantics=("parallel", "arbitrary"),
        ),
        cost_estimate=cost,
    )(bi, bj, x_p, x_p)

    if grid_m > 1:
        # Mirror the lower triangle (only j >= i block pairs were computed).
        blk = jnp.arange(m_pad, dtype=jnp.int32) // tm
        upper = blk[:, None] <= blk[None, :]
        out_p = jnp.where(upper, out_p, out_p.T)

    if m_pad != m:
        out_p = out_p[:m, :m]
    return out_p


def _rel_err(a, b):
    a = a.astype(jnp.float32)
    b = b.astype(jnp.float32)
    return float(jnp.linalg.norm(a - b) / (jnp.linalg.norm(b) + 1e-6))


if __name__ == "__main__":
    key = jax.random.PRNGKey(0)
    k1, k2, k3 = jax.random.split(key, 3)

    # 1) Small shape consistent with the module (seq=8, hidden=32), f32.
    x_small = jax.random.normal(k1, (8, 32), dtype=jnp.float32)
    out_small = jax.block_until_ready(linear_kernel(x_small))
    ref_small = jnp.dot(x_small, x_small.T, precision=lax.Precision.HIGHEST)
    assert out_small.shape == (8, 8)
    assert _rel_err(out_small, ref_small) < 1e-2, "small f32 mismatch"

    # 2) Multi-block symmetric path with bf16 operands (f32 accumulation in-kernel):
    #    M=640 -> padded to 768, tm=256, 6 upper-triangular block pairs; K=896 -> tk=896.
    x_big = jax.random.normal(k2, (640, 896), dtype=jnp.float32).astype(jnp.bfloat16)
    out_big = jax.block_until_ready(linear_kernel(x_big))
    xb32 = x_big.astype(jnp.float32)
    ref_big = jnp.dot(xb32, xb32.T, precision=lax.Precision.HIGHEST)
    assert out_big.shape == (640, 640)
    assert _rel_err(out_big, ref_big) < 2e-2, "bf16 mismatch"

    # 3) Unaligned M and K (no K padding: full-K block): M=130, K=200, f32.
    x_odd = jax.random.normal(k3, (130, 200), dtype=jnp.float32)
    out_odd = jax.block_until_ready(linear_kernel(x_odd))
    ref_odd = jnp.dot(x_odd, x_odd.T, precision=lax.Precision.HIGHEST)
    assert out_odd.shape == (130, 130)
    assert _rel_err(out_odd, ref_odd) < 1e-2, "odd-shape f32 mismatch"

    print("KERNEL_OK")
</pallas_src>

<mosaic_0001>
module attributes {stable_mosaic.version = 11 : i64} {
  func.func @_gram_sym_kernel(%arg0: i32, %arg1: i32, %arg2: memref<1xi32, #tpu.memory_space<smem>>, %arg3: memref<1xi32, #tpu.memory_space<smem>>, %arg4: memref<128x32xf32, #tpu.memory_space<vmem>>, %arg5: memref<128x32xf32, #tpu.memory_space<vmem>>, %arg6: memref<128x128xf32, #tpu.memory_space<vmem>>, %arg7: memref<128x128xf32, #tpu.memory_space<vmem>>) attributes {dimension_semantics = [#tpu.dimension_semantics<parallel>, #tpu.dimension_semantics<arbitrary>], iteration_bounds = array<i64: 1, 1>, scalar_prefetch = 2 : i64, scratch_operands = 1 : i64, tpu.core_type = #tpu.core_type<tc>, window_params = [{transform_indices = @transform_0, window_bounds = array<i64: 128, 32>}, {transform_indices = @transform_1, window_bounds = array<i64: 128, 32>}, {transform_indices = @transform_2, window_bounds = array<i64: 128, 128>}]} {
    %c0_i32 = arith.constant 0 : i32
    %0 = arith.cmpi eq, %arg1, %c0_i32 : i32
    %1 = arith.extui %0 : i1 to i32
    %c0_i32_0 = arith.constant 0 : i32
    %2 = arith.cmpi ne, %1, %c0_i32_0 : i32
    scf.if %2 {
      %cst_10 = arith.constant 0.000000e+00 : f32
      %12 = vector.broadcast %cst_10 : f32 to vector<128x128xf32>
      %c0_11 = arith.constant 0 : index
      %c0_12 = arith.constant 0 : index
      %13 = vector.load %arg7[%c0_11, %c0_12] : memref<128x128xf32, #tpu.memory_space<vmem>>, vector<128x128xf32>
      tpu.vector_store %arg7[%c0_11, %c0_12], %12 {strides = array<i32>} : memref<128x128xf32, #tpu.memory_space<vmem>>, vector<128x128xf32>,
    } else {
    }
    %c0 = arith.constant 0 : index
    %c0_1 = arith.constant 0 : index
    %3 = vector.load %arg7[%c0, %c0_1] : memref<128x128xf32, #tpu.memory_space<vmem>>, vector<128x128xf32>
    %c0_2 = arith.constant 0 : index
    %c0_3 = arith.constant 0 : index
    %4 = vector.load %arg4[%c0_2, %c0_3] : memref<128x32xf32, #tpu.memory_space<vmem>>, vector<128x32xf32>
    %c0_4 = arith.constant 0 : index
    %c0_5 = arith.constant 0 : index
    %5 = vector.load %arg5[%c0_4, %c0_5] : memref<128x32xf32, #tpu.memory_space<vmem>>, vector<128x32xf32>
    %cst = arith.constant dense<0.000000e+00> : vector<128x128xf32>
    %6 = tpu.matmul %4, %5, %cst {dimension_numbers = #tpu.dot_dimension_numbers<[1], [1], [0], [0], [0, 0, 1, 0], [], []>} : vector<128x32xf32>, vector<128x32xf32>, vector<128x128xf32> -> vector<128x128xf32>
    %7 = arith.addf %3, %6 : vector<128x128xf32>
    %c0_6 = arith.constant 0 : index
    %c0_7 = arith.constant 0 : index
    %8 = vector.load %arg7[%c0_6, %c0_7] : memref<128x128xf32, #tpu.memory_space<vmem>>, vector<128x128xf32>
    tpu.vector_store %arg7[%c0_6, %c0_7], %7 {strides = array<i32>} : memref<128x128xf32, #tpu.memory_space<vmem>>, vector<128x128xf32>,
    %c0_i32_8 = arith.constant 0 : i32
    %9 = arith.cmpi eq, %arg1, %c0_i32_8 : i32
    %10 = arith.extui %9 : i1 to i32
    %c0_i32_9 = arith.constant 0 : i32
    %11 = arith.cmpi ne, %10, %c0_i32_9 : i32
    scf.if %11 {
      %c0_10 = arith.constant 0 : index
      %c0_11 = arith.constant 0 : index
      %12 = vector.load %arg7[%c0_10, %c0_11] : memref<128x128xf32, #tpu.memory_space<vmem>>, vector<128x128xf32>
      %c0_12 = arith.constant 0 : index
      %c0_13 = arith.constant 0 : index
      %13 = vector.load %arg6[%c0_12, %c0_13] : memref<128x128xf32, #tpu.memory_space<vmem>>, vector<128x128xf32>
      tpu.vector_store %arg6[%c0_12, %c0_13], %12 {strides = array<i32>} : memref<128x128xf32, #tpu.memory_space<vmem>>, vector<128x128xf32>,
    } else {
    }
    return
  }
  func.func @transform_0(%arg0: i32, %arg1: i32, %arg2: memref<1xi32, #tpu.memory_space<smem>>, %arg3: memref<1xi32, #tpu.memory_space<smem>>) -> (i32, i32) {
    %0 = arith.index_cast %arg0 : i32 to index
    %1 = memref.load %arg2[%0] : memref<1xi32, #tpu.memory_space<smem>>
    %c0_i32 = arith.constant 0 : i32
    return %1, %arg1 : i32, i32
  }
  func.func @transform_1(%arg0: i32, %arg1: i32, %arg2: memref<1xi32, #tpu.memory_space<smem>>, %arg3: memref<1xi32, #tpu.memory_space<smem>>) -> (i32, i32) {
    %0 = arith.index_cast %arg0 : i32 to index
    %1 = memref.load %arg3[%0] : memref<1xi32, #tpu.memory_space<smem>>
    %c0_i32 = arith.constant 0 : i32
    return %1, %arg1 : i32, i32
  }
  func.func @transform_2(%arg0: i32, %arg1: i32, %arg2: memref<1xi32, #tpu.memory_space<smem>>, %arg3: memref<1xi32, #tpu.memory_space<smem>>) -> (i32, i32) {
    %0 = arith.index_cast %arg0 : i32 to index
    %1 = memref.load %arg2[%0] : memref<1xi32, #tpu.memory_space<smem>>
    %2 = arith.index_cast %arg0 : i32 to index
    %3 = memref.load %arg3[%2] : memref<1xi32, #tpu.memory_space<smem>>
    %c0_i32 = arith.constant 0 : i32
    return %1, %3 : i32, i32
  }
}

</mosaic_0001>

<bundles_post_ra>
// kernel: tpu_custom_call.1
= control target key start
LH: loop header
LB: loop body
LE: loop exit
PB: predicated region body
PF: predicated region fallthrough
CT: control target
= control target key end

     0   :  { %s688_s0 = inlined_call_operand.<no memory space> [shape: s32[1], index: 0, kind: input, shape index: {}]   ;;  %s689_s1 = inlined_call_operand.<no memory space> [shape: s32[1], index: 1, kind: input, shape index: {}]   ;;  %s690_s2 = inlined_call_operand.vmem [shape: f32[128,32], index: 2, kind: input, shape index: {}]   ;;  %s691_s3 = inlined_call_operand.vmem [shape: f32[128,32], index: 3, kind: input, shape index: {}]   ;;  %s692_s4 = inlined_call_operand.hbm [shape: f32[128,128], index: 4, kind: output, shape index: {}]  }
   0x1   :  { %s402_s17 = sshll.u32 %s689_s1, 4 }
   0x2   :  { %11 = vsyncpa [#allocation7], 0  ;;  %p54_p0 = scmp.lt.s32.totalorder %s402_s17, 15  ;;  %vm131_vm0 = vcmask 261120   ;;  %s610_s23 = sshll.u32 %s688_s0, 4 }
   0x3   :  { %p46_p1 = scmp.lt.s32.totalorder %s610_s23, 15  ;;  %s367_s29 = sadd.s32 %s610_s23, %s689_s1 }
   0x4   :  { %s694_s17 = smov (!%p54_p0, %s402_s17), 15  ;;  %s437_s30 = sshll.u32 %s367_s29, 3 }
   0x5   :  { %s403_s18 = sshll.u32 %s694_s17, 3  ;;  %s369_s7 = scalar_lea.hbm %s692_s4, %s437_s30 }
   0x6   :  { %s549_s21 = scalar_lea.vmem %s691_s3, %s403_s18  ;;  %s372_s8 = sshll.u32 %s369_s7, 4  ;;  %s373_s8 = int_to_ptr.hbm [resolvable:$true] %s372_s8 }
   0x7   :  { %v130_v0 = vld [vmem:[%s549_s21 + $0x78] sm:$0xff]  ;;  %v129_v1 = vld [vmem:[%s549_s21 + $0x70] sm:$0xff]  ;;  %v128_v2 = vld [vmem:[%s549_s21 + $0x68] sm:$0xff]  ;;  %s47_s0 = scalar_select %p46_p1, %s610_s23, 15 }
   0x8   :  { %439 = vmatpush.xpose.msk.msra.mxu2 %vm131_vm0, %v130_v0  ;;  %440 = vmatpush.xpose.msk.msra.mxu3 %vm131_vm0, %v130_v0  ;;  %v127_v3 = vld [vmem:[%s549_s21 + $0x60] sm:$0xff]  ;;  %v126_v4 = vld [vmem:[%s549_s21 + $0x58] sm:$0xff]  ;;  %v125_v5 = vld [vmem:[%s549_s21 + $0x50] sm:$0xff]  ;;  %s515_s9 = smov [#allocation6]   ;;  %s501_s1 = sshra.s32 %s373_s8, 4  ;;  %s502_s1 = int_to_ptr.hbm [resolvable:$true] %s501_s1 }
   0x9   :  { %404 = vmatpush.xpose.msk.msra.mxu0 %vm131_vm0, %v130_v0  ;;  %438 = vmatpush.xpose.msk.msra.mxu1 %vm131_vm0, %v130_v0  ;;  %v124_v6 = vld [vmem:[%s549_s21 + $0x48] sm:$0xff]  ;;  %v123_v7 = vld [vmem:[%s549_s21 + $0x40] sm:$0xff]  ;;  %v122_v8 = vld [vmem:[%s549_s21 + $0x38] sm:$0xff]  ;;  %s401_s24 = sshll.u32 %s47_s0, 3  ;;  %s370_s10 = sshll.u32 %s515_s9, 4  ;;  %s371_s10 = int_to_ptr.vmem [resolvable:$true] %s370_s10 }
   0xa   :  { %v121_v9 = vld [vmem:[%s549_s21 + $0x30] sm:$0xff]  ;;  %v120_v10 = vld [vmem:[%s549_s21 + $0x28] sm:$0xff]  ;;  %v119_v11 = vld [vmem:[%s549_s21 + $0x20] sm:$0xff]  ;;  %s637_s27 = scalar_lea.vmem %s690_s2, %s401_s24  ;;  %s503_s11 = scalar_lea.hbm %s502_s1, 128 }
   0xb   :  { %v118_v12 = vld [vmem:[%s549_s21 + $0x18] sm:$0xff]  ;;  %v117_v13 = vld [vmem:[%s549_s21 + $0x10] sm:$0xff]  ;;  %v116_v14 = vld [vmem:[%s549_s21 + $0x8] sm:$0xff]  ;;  %p504_p2 = scmp.ne.s32.totalorder %s502_s1, %s503_s11  ;;  %s505_s14 = scalar_lea.hbm %s692_s4, 128 }
   0xc   :  { %442 = vmatpush.xpose.msk.msra.mxu2 %vm131_vm0, %v129_v1  ;;  %443 = vmatpush.xpose.msk.msra.mxu3 %vm131_vm0, %v129_v1  ;;  %v115_v15 = vld [vmem:[%s549_s21] sm:$0xff]  ;;  %v108_v20 = vld [vmem:[%s637_s27 + $0x48] sm:$0xff]  ;;  %v109_v24 = vld [vmem:[%s637_s27 + $0x50] sm:$0xff]  ;;  %p506_p3 = scmp.lt.s32.totalorder %s502_s1, %s692_s4  ;;  %p507_p4 = scmp.lt.s32.totalorder %s505_s14, %s503_s11 }
   0xd   :  { %405 = vmatpush.xpose.msk.msra.mxu0 %vm131_vm0, %v129_v1  ;;  %441 = vmatpush.xpose.msk.msra.mxu1 %vm131_vm0, %v129_v1  ;;  %v107_v16 = vld [vmem:[%s637_s27 + $0x40] sm:$0xff]  ;;  %v112_v21 = vld [vmem:[%s637_s27 + $0x68] sm:$0xff]  ;;  %v113_v25 = vld [vmem:[%s637_s27 + $0x70] sm:$0xff] }
   0xe   :  { %v111_v17 = vld [vmem:[%s637_s27 + $0x60] sm:$0xff]  ;;  %v100_v22 = vld [vmem:[%s637_s27 + $0x8] sm:$0xff]  ;;  %v101_v26 = vld [vmem:[%s637_s27 + $0x10] sm:$0xff]  ;;  %p508_p5 = por %p507_p4, %p506_p3 }
   0xf   :  { %v99_v18 = vld [vmem:[%s637_s27] sm:$0xff]  ;;  %v104_v23 = vld [vmem:[%s637_s27 + $0x28] sm:$0xff]  ;;  %v105_v27 = vld [vmem:[%s637_s27 + $0x30] sm:$0xff] }
  0x10   :  { %445 = vmatpush.xpose.msk.msra.mxu2 %vm131_vm0, %v128_v2  ;;  %446 = vmatpush.xpose.msk.msra.mxu3 %vm131_vm0, %v128_v2  ;;  %v103_v19 = vld [vmem:[%s637_s27 + $0x20] sm:$0xff]  ;;  %v110_v28 = vld [vmem:[%s637_s27 + $0x58] sm:$0xff]  ;;  %p509_p6 = pnand %p508_p5, %p504_p2 }
  0x11   :  { %406 = vmatpush.xpose.msk.msra.mxu0 %vm131_vm0, %v128_v2  ;;  %444 = vmatpush.xpose.msk.msra.mxu1 %vm131_vm0, %v128_v2  ;;  %v114_v29 = vld [vmem:[%s637_s27 + $0x78] sm:$0xff] }
  0x12   :  { %v102_v30 = vld [vmem:[%s637_s27 + $0x18] sm:$0xff] }
  0x13   :  { %v106_v31 = vld [vmem:[%s637_s27 + $0x38] sm:$0xff] }
  0x14   :  { %448 = vmatpush.xpose.msk.msra.mxu2 %vm131_vm0, %v127_v3  ;;  %449 = vmatpush.xpose.msk.msra.mxu3 %vm131_vm0, %v127_v3 }
  0x15   :  { %407 = vmatpush.xpose.msk.msra.mxu0 %vm131_vm0, %v127_v3  ;;  %447 = vmatpush.xpose.msk.msra.mxu1 %vm131_vm0, %v127_v3 }
  0x18   :  { %451 = vmatpush.xpose.msk.msra.mxu2 %vm131_vm0, %v126_v4  ;;  %452 = vmatpush.xpose.msk.msra.mxu3 %vm131_vm0, %v126_v4 }
  0x19   :  { %408 = vmatpush.xpose.msk.msra.mxu0 %vm131_vm0, %v126_v4  ;;  %450 = vmatpush.xpose.msk.msra.mxu1 %vm131_vm0, %v126_v4 }
  0x1c   :  { %454 = vmatpush.xpose.msk.msra.mxu2 %vm131_vm0, %v125_v5  ;;  %455 = vmatpush.xpose.msk.msra.mxu3 %vm131_vm0, %v125_v5 }
  0x1d   :  { %409 = vmatpush.xpose.msk.msra.mxu0 %vm131_vm0, %v125_v5  ;;  %453 = vmatpush.xpose.msk.msra.mxu1 %vm131_vm0, %v125_v5 }
  0x20   :  { %457 = vmatpush.xpose.msk.msra.mxu2 %vm131_vm0, %v124_v6  ;;  %458 = vmatpush.xpose.msk.msra.mxu3 %vm131_vm0, %v124_v6 }
  0x21   :  { %410 = vmatpush.xpose.msk.msra.mxu0 %vm131_vm0, %v124_v6  ;;  %456 = vmatpush.xpose.msk.msra.mxu1 %vm131_vm0, %v124_v6 }
  0x24   :  { %460 = vmatpush.xpose.msk.msra.mxu2 %vm131_vm0, %v123_v7  ;;  %461 = vmatpush.xpose.msk.msra.mxu3 %vm131_vm0, %v123_v7 }
  0x25   :  { %411 = vmatpush.xpose.msk.msra.mxu0 %vm131_vm0, %v123_v7  ;;  %459 = vmatpush.xpose.msk.msra.mxu1 %vm131_vm0, %v123_v7 }
  0x28   :  { %463 = vmatpush.xpose.msk.msra.mxu2 %vm131_vm0, %v122_v8  ;;  %464 = vmatpush.xpose.msk.msra.mxu3 %vm131_vm0, %v122_v8 }
  0x29   :  { %412 = vmatpush.xpose.msk.msra.mxu0 %vm131_vm0, %v122_v8  ;;  %462 = vmatpush.xpose.msk.msra.mxu1 %vm131_vm0, %v122_v8 }
  0x2c   :  { %466 = vmatpush.xpose.msk.msra.mxu2 %vm131_vm0, %v121_v9  ;;  %467 = vmatpush.xpose.msk.msra.mxu3 %vm131_vm0, %v121_v9 }
  0x2d   :  { %413 = vmatpush.xpose.msk.msra.mxu0 %vm131_vm0, %v121_v9  ;;  %465 = vmatpush.xpose.msk.msra.mxu1 %vm131_vm0, %v121_v9 }
  0x30   :  { %469 = vmatpush.xpose.msk.msra.mxu2 %vm131_vm0, %v120_v10  ;;  %470 = vmatpush.xpose.msk.msra.mxu3 %vm131_vm0, %v120_v10 }
  0x31   :  { %414 = vmatpush.xpose.msk.msra.mxu0 %vm131_vm0, %v120_v10  ;;  %468 = vmatpush.xpose.msk.msra.mxu1 %vm131_vm0, %v120_v10 }
  0x34   :  { %472 = vmatpush.xpose.msk.msra.mxu2 %vm131_vm0, %v119_v11  ;;  %473 = vmatpush.xpose.msk.msra.mxu3 %vm131_vm0, %v119_v11 }
  0x35   :  { %415 = vmatpush.xpose.msk.msra.mxu0 %vm131_vm0, %v119_v11  ;;  %471 = vmatpush.xpose.msk.msra.mxu1 %vm131_vm0, %v119_v11 }
  0x38   :  { %475 = vmatpush.xpose.msk.msra.mxu2 %vm131_vm0, %v118_v12  ;;  %476 = vmatpush.xpose.msk.msra.mxu3 %vm131_vm0, %v118_v12 }
  0x39   :  { %416 = vmatpush.xpose.msk.msra.mxu0 %vm131_vm0, %v118_v12  ;;  %474 = vmatpush.xpose.msk.msra.mxu1 %vm131_vm0, %v118_v12 }
  0x3c   :  { %478 = vmatpush.xpose.msk.msra.mxu2 %vm131_vm0, %v117_v13  ;;  %479 = vmatpush.xpose.msk.msra.mxu3 %vm131_vm0, %v117_v13 }
  0x3d   :  { %417 = vmatpush.xpose.msk.msra.mxu0 %vm131_vm0, %v117_v13  ;;  %477 = vmatpush.xpose.msk.msra.mxu1 %vm131_vm0, %v117_v13 }
  0x40   :  { %481 = vmatpush.xpose.msk.msra.mxu2 %vm131_vm0, %v116_v14  ;;  %482 = vmatpush.xpose.msk.msra.mxu3 %vm131_vm0, %v116_v14 }
  0x41   :  { %418 = vmatpush.xpose.msk.msra.mxu0 %vm131_vm0, %v116_v14  ;;  %480 = vmatpush.xpose.msk.msra.mxu1 %vm131_vm0, %v116_v14 }
  0x44   :  { %484 = vmatpush.xpose.msk.msra.mxu2 %vm131_vm0, %v115_v15  ;;  %485 = vmatpush.xpose.msk.msra.mxu3 %vm131_vm0, %v115_v15 }
  0x45   :  { %419 = vmatpush.xpose.msk.msra.mxu0 %vm131_vm0, %v115_v15  ;;  %483 = vmatpush.xpose.msk.msra.mxu1 %vm131_vm0, %v115_v15 }
  0x47   :  { %428 = vmatmul.msk.f32.vlgmr.msra.gmra.mxu2 %vm131_vm0, %v107_v16  ;;  %432 = vmatmul.msk.f32.vlgmr.msra.gmra.mxu3 %vm131_vm0, %v111_v17 }
  0x48   :  { %420 = vmatmul.msk.f32.vlgmr.msra.gmra.mxu0 %vm131_vm0, %v99_v18  ;;  %424 = vmatmul.msk.f32.vlgmr.msra.gmra.mxu1 %vm131_vm0, %v103_v19 }
  0x4f   :  { %429 = vmatmul.msk.f32.gmra.mxu2 %vm131_vm0, %v108_v20  ;;  %433 = vmatmul.msk.f32.gmra.mxu3 %vm131_vm0, %v112_v21 }
  0x50   :  { %421 = vmatmul.msk.f32.gmra.mxu0 %vm131_vm0, %v100_v22  ;;  %425 = vmatmul.msk.f32.gmra.mxu1 %vm131_vm0, %v104_v23 }
  0x57   :  { %430 = vmatmul.msk.f32.gmra.mxu2 %vm131_vm0, %v109_v24  ;;  %434 = vmatmul.msk.f32.gmra.mxu3 %vm131_vm0, %v113_v25 }
  0x58   :  { %422 = vmatmul.msk.f32.gmra.mxu0 %vm131_vm0, %v101_v26  ;;  %426 = vmatmul.msk.f32.gmra.mxu1 %vm131_vm0, %v105_v27 }
  0x5f   :  { %431 = vmatmul.msk.f32.gmra.mxu2 %vm131_vm0, %v110_v28  ;;  %435 = vmatmul.msk.f32.gmra.mxu3 %vm131_vm0, %v114_v29 }
  0x60   :  { %423 = vmatmul.msk.f32.gmra.mxu0 %vm131_vm0, %v102_v30  ;;  %427 = vmatmul.msk.f32.gmra.mxu1 %vm131_vm0, %v106_v31 }
  0xc5   :  { %v245_v32 = vpop.f32.mrf.mxu0  ;;  %v257_v33 = vpop.f32.mrf.mxu1 }
  0xc6   :  { %344 = vst [vmem:[#allocation6] sm:$0xff] %v245_v32 }
  0xc7   :  { %348 = vst [vmem:[#allocation6 + $0x20] sm:$0xff] %v257_v33 }
  0xca   :  { %v269_v34 = vpop.f32.mrf.mxu2  ;;  %v281_v35 = vpop.f32.mrf.mxu3 }
  0xcb   :  { %352 = vst [vmem:[#allocation6 + $0x40] sm:$0xff] %v269_v34 }
  0xcc   :  { %356 = vst [vmem:[#allocation6 + $0x60] sm:$0xff] %v281_v35 }
  0xcd   :  { %v248_v36 = vpop.f32.mrf.mxu0  ;;  %v260_v37 = vpop.f32.mrf.mxu1 }
  0xce   :  { %345 = vst [vmem:[#allocation6 + $0x8] sm:$0xff] %v248_v36 }
  0xcf   :  { %349 = vst [vmem:[#allocation6 + $0x28] sm:$0xff] %v260_v37 }
  0xd2   :  { %v272_v38 = vpop.f32.mrf.mxu2  ;;  %v284_v39 = vpop.f32.mrf.mxu3 }
  0xd3   :  { %353 = vst [vmem:[#allocation6 + $0x48] sm:$0xff] %v272_v38 }
  0xd4   :  { %357 = vst [vmem:[#allocation6 + $0x68] sm:$0xff] %v284_v39 }
  0xd5   :  { %v251_v40 = vpop.f32.mrf.mxu0  ;;  %v263_v41 = vpop.f32.mrf.mxu1 }
  0xd6   :  { %346 = vst [vmem:[#allocation6 + $0x10] sm:$0xff] %v251_v40 }
  0xd7   :  { %350 = vst [vmem:[#allocation6 + $0x30] sm:$0xff] %v263_v41 }
  0xda   :  { %v275_v42 = vpop.f32.mrf.mxu2  ;;  %v287_v43 = vpop.f32.mrf.mxu3 }
  0xdb   :  { %354 = vst [vmem:[#allocation6 + $0x50] sm:$0xff] %v275_v42 }
  0xdc   :  { %358 = vst [vmem:[#allocation6 + $0x70] sm:$0xff] %v287_v43 }
  0xdd   :  { %v254_v44 = vpop.f32.mrf.mxu0  ;;  %v266_v45 = vpop.f32.mrf.mxu1 }
  0xde   :  { %347 = vst [vmem:[#allocation6 + $0x18] sm:$0xff] %v254_v44 }
  0xdf   :  { %351 = vst [vmem:[#allocation6 + $0x38] sm:$0xff] %v266_v45 }
  0xe2   :  { %v278_v46 = vpop.f32.mrf.mxu2  ;;  %v290_v47 = vpop.f32.mrf.mxu3 }
  0xe3   :  { %355 = vst [vmem:[#allocation6 + $0x58] sm:$0xff] %v278_v46 }
  0xe4   :  { %359 = vst [vmem:[#allocation6 + $0x78] sm:$0xff] %v290_v47 }
  0xe5   :  { %512 = shalt.err (!%p509_p6)
}
  0xe6   :  { %s516_s17 = smov 128   ;;  %s517_s18 = smov 8  }
  0xe7   :  { %378 = dma.vmem_to_hbm [thread:$0]  %s371_s10, 2048, %s373_s8, [#allocation7], %s516_s17, %s516_s17, %s517_s18  }
  0xe8   :  { %513 = dma.done.wait [#allocation7], 2048  }
  0xe9   :  { %514 = vsyncadd [#allocation7], 4294965248 }
  0xea   :  { %383 = vsyncpa [#allocation7], 1 }

</bundles_post_ra>
